<compile_context>
chip_gen: v6e
topology: v6e:2x2x1
jax: 0.10.0
libtpu: 0.0.40
codegen_flags: <defaults>
</compile_context>

<pallas_src>
import functools

import numpy as np
import jax
import jax.numpy as jnp
from jax import lax
from jax.experimental import pallas as pl
from jax.experimental.pallas import tpu as pltpu


_NEG_HUGE = float(np.finfo(np.float32).min)   # sentinel: "no valid row seen yet"


def _round_up(x, m):
    return ((x + m - 1) // m) * m


def _vmem_capacity_bytes(default=64 << 20):
    """Physical VMEM of the local TPU generation (v7x=64 MiB, v5e/v6e=128 MiB)."""
    try:
        cap = getattr(pltpu.get_tpu_info(), "vmem_capacity_bytes", None)
        if cap:
            return int(cap)
    except Exception:
        pass
    return default


def _pick_block_rows(n_rows, d, itemsize, vmem_cap):
    """Rows per feature tile.

    Target ~4 MiB per tile (HBM roofline sweet spot), but never more than
    vmem_cap/16 per tile so the double-buffered pair stays <= vmem_cap/8 on
    every generation (v7x has half the VMEM of v5e/v6e).
    """
    target = min(4 << 20, max(vmem_cap // 16, 512 << 10))
    tk = max(8, (target // max(d * itemsize, 1)) // 8 * 8)
    tk = min(tk, 4096)
    tk = min(tk, _round_up(n_rows, 8))
    return int(max(tk, 8))


def _neg_lse_kernel(feat_ref, w_ref, anc_ref, out_m_ref, out_s_ref,
                    m_ref, s_ref, ansq_ref, *,
                    temperature, n_rows, block_rows, steps_per_core):
    """Streaming masked log-sum-exp of cos(features[0], row)/T over negative rows.

    Grid = (num_splits, steps_per_core):
      axis 0 ("parallel")  : row-range split so v7x can use both TensorCores
      axis 1 ("arbitrary") : reduction over this core's row tiles

    feat_ref  : (TK, D)    feature tile, native dtype (bf16 goes straight to MXU)
    w_ref     : (TK, 1)    0/1 weight, 1 exactly on selected negative rows
    anc_ref   : (D, 1)     negatives anchor = features[0] (resident, native dtype)
    out_m_ref : (8, 128)   per-core running max   (written on the last step)
    out_s_ref : (8, 128)   per-core rescaled sum  (written on the last step)
    m_ref/s_ref/ansq_ref : (1,1) f32 VMEM scratch (running max / sum / |a|^2)
    """
    c = pl.program_id(0)
    k = pl.program_id(1)
    eps = jnp.float32(1e-8)
    inv_t = jnp.float32(1.0 / temperature)

    @pl.when(k == 0)
    def _init():
        m_ref[...] = jnp.full_like(m_ref, _NEG_HUGE)
        s_ref[...] = jnp.zeros_like(s_ref)
        # Hoisted loop-invariant anchor work: |a|^2 computed once per core.
        af = anc_ref[...].astype(jnp.float32)
        ansq_ref[...] = jnp.sum(af * af, keepdims=True)          # (1, 1)

    # ---------------- negatives tile: masked online log-sum-exp --------------
    x = feat_ref[...]                                             # native dtype
    dots = jnp.dot(x, anc_ref[...],
                   preferred_element_type=jnp.float32)            # (TK, 1)  MXU
    xf = x.astype(jnp.float32)
    x_nsq = jnp.sum(xf * xf, axis=1, keepdims=True)               # (TK, 1)
    denom = jnp.maximum(jnp.sqrt(x_nsq * ansq_ref[...]), eps)     # |x||a| clamp
    scaled = dots * inv_t / denom                                 # cos / T

    # Mask non-selected rows and rows past the true end (handles the ragged
    # tail tile and the clamped duplicate tile of the 2-way core split).
    row = (c * steps_per_core + k) * block_rows + lax.broadcasted_iota(
        jnp.int32, (block_rows, 1), 0)
    valid = (row < n_rows) & (w_ref[...] > 0.0)

    t_max = jnp.max(jnp.where(valid, scaled, _NEG_HUGE), keepdims=True)   # (1,1)
    m_prev = m_ref[...]
    m_new = jnp.maximum(m_prev, t_max)
    p = jnp.where(valid, jnp.exp(scaled - m_new), 0.0)            # invalid -> 0
    s_ref[...] = s_ref[...] * jnp.exp(m_prev - m_new) + jnp.sum(p, keepdims=True)
    m_ref[...] = m_new

    @pl.when(k == pl.num_programs(1) - 1)
    def _emit():
        out_m_ref[...] = jnp.broadcast_to(m_ref[...], out_m_ref.shape)
        out_s_ref[...] = jnp.broadcast_to(s_ref[...], out_s_ref.shape)


class ContrastiveLoss:
    """JAX/Pallas port of the PyTorch ContrastiveLoss module."""

    def __init__(self, temperature, num_negatives, num_positives=1, block_rows=None):
        self.temperature = float(temperature)
        self.num_negatives = int(num_negatives)
        self.num_positives = int(num_positives)
        self.block_rows = None if block_rows is None else _round_up(int(block_rows), 8)
        self._calls = {}   # (n, d, p_pad, tk, splits, spc, dtype) -> jitted callable

    def _build_call(self, n, d, dtype, tk, num_splits, steps_per_core,
                    total_steps, vmem_cap):
        last_blk = total_steps - 1

        def tile_map(c, k):
            # Clamp so blocks are always in range (core 1 of an odd split may
            # be handed one extra step; its rows are masked out in-kernel).
            return (jnp.minimum(c * steps_per_core + k, last_blk), 0)

        kernel = functools.partial(
            _neg_lse_kernel, temperature=self.temperature, n_rows=n,
            block_rows=tk, steps_per_core=steps_per_core)

        # Explicit VMEM budget: 2x double-buffered (feature + weight) tiles,
        # resident anchor, the tiny per-core outputs, plus generous slack.
        itemsize = jnp.dtype(dtype).itemsize
        feat_tile = tk * d * itemsize
        w_tile = tk * 4
        anc_bytes = d * itemsize
        out_bytes = 2 * num_splits * 8 * 128 * 4
        need = 2 * (feat_tile + w_tile) + 2 * anc_bytes + 2 * out_bytes + 4 * 4096
        vmem_limit = int(min(max(2 * need + (8 << 20), 32 << 20),
                             vmem_cap - (2 << 20)))

        grid_spec = pltpu.PrefetchScalarGridSpec(
            num_scalar_prefetch=0,
            grid=(num_splits, steps_per_core),
            in_specs=[
                pl.BlockSpec((tk, d), tile_map),             # feature tiles (streamed)
                pl.BlockSpec((tk, 1), tile_map),             # 0/1 negative weights
                pl.BlockSpec((d, 1), lambda c, k: (0, 0)),   # negatives anchor (resident)
            ],
            out_specs=[
                pl.BlockSpec((8, 128), lambda c, k: (c, 0)),  # per-core running max
                pl.BlockSpec((8, 128), lambda c, k: (c, 0)),  # per-core rescaled sum
            ],
            scratch_shapes=[pltpu.VMEM((1, 1), jnp.float32)] * 3,
        )
        neg_call = pl.pallas_call(
            kernel,
            out_shape=(jax.ShapeDtypeStruct((num_splits * 8, 128), jnp.float32),
                       jax.ShapeDtypeStruct((num_splits * 8, 128), jnp.float32)),
            grid_spec=grid_spec,
            compiler_params=pltpu.CompilerParams(
                dimension_semantics=("parallel", "arbitrary"),
                vmem_limit_bytes=vmem_limit),
        )

        inv_t = jnp.float32(1.0 / self.temperature)
        eps = jnp.float32(1e-8)

        def run(feats, w, anc_n_col, anc_p_row, pos_t):
            out_m, out_s = neg_call(feats, w, anc_n_col)
            m_c = out_m[0::8, 0]                     # (num_splits,)
            s_c = out_s[0::8, 0]
            mm = jnp.max(m_c)
            total = jnp.sum(s_c * jnp.exp(m_c - mm))
            log_sum_neg = mm + jnp.log(total)        # -inf if no valid negatives

            # Positives epilogue: <= num_positives rows -> tiny, plain XLA.
            ap = anc_p_row.astype(jnp.float32)       # (1, D)
            pt = pos_t.astype(jnp.float32)           # (D, P)
            dots_p = ap @ pt                         # (1, P)
            denom_p = jnp.maximum(
                jnp.sqrt(jnp.sum(pt * pt, axis=0, keepdims=True)
                         * jnp.sum(ap * ap, keepdims=True)), eps)
            scaled_p = dots_p * inv_t / denom_p      # cos_pos / T
            # loss = log(exp_pos + sum_neg) - log(exp_pos)
            #      = softplus(log_sum_neg - cos_pos/T)   (log domain, no overflow)
            return jnp.logaddexp(jnp.float32(0.0), log_sum_neg - scaled_p)[0]

        return jax.jit(run)

    def __call__(self, features, masks):
        masks = np.asarray(masks)
        n = int(features.shape[0])
        feats = jnp.reshape(features, (n, -1))       # keep incoming dtype (bf16 OK)
        d = int(feats.shape[1])

        # ---- index selection: identical to the PyTorch forward (host numpy) ----
        negative_rows = np.arange(self.num_positives + 1, n)
        negative_rows = negative_rows[np.where(masks[self.num_positives + 1:] == 1)]
        positive_indices = np.arange(0, self.num_positives + 1)
        positive_indices = positive_indices[np.where(masks[:self.num_positives + 1] == 1)]

        if positive_indices.size == 0:
            raise ValueError("mask removed the anchor and all positives")
        p_count = int(positive_indices.size) - 1
        if p_count == 0:
            # No positives survive the mask -> empty loss (matches an empty
            # tensor from the original); skip the kernel entirely.
            return jnp.zeros((0,), jnp.float32)

        # Dense 0/1 weight over rows: 1 exactly on the selected negative rows.
        w_np = np.zeros((n, 1), np.float32)
        w_np[negative_rows, 0] = 1.0
        w = jnp.asarray(w_np)

        # Tiny host/XLA-side pieces (anchors + <= num_positives rows).
        anc_neg_col = jnp.transpose(feats[0:1, :])                   # (D, 1)
        anchor_pos = int(positive_indices[0])
        anc_pos_row = feats[anchor_pos][None, :]                     # (1, D)
        p_pad = self.num_positives
        pad_idx = np.concatenate(
            [positive_indices[1:],
             np.full(p_pad - p_count, anchor_pos)]).astype(np.int32)
        pos_t = jnp.transpose(feats[jnp.asarray(pad_idx)])           # (D, P_pad)

        itemsize = jnp.dtype(feats.dtype).itemsize
        vmem_cap = _vmem_capacity_bytes()
        tk = self.block_rows or _pick_block_rows(n, d, itemsize, vmem_cap)
        total_steps = pl.cdiv(n, tk)
        num_splits = 2 if total_steps >= 2 else 1     # dual-TC row split (v7x)
        steps_per_core = pl.cdiv(total_steps, num_splits)

        key = (n, d, p_pad, tk, num_splits, steps_per_core, str(feats.dtype))
        if key not in self._calls:
            self._calls[key] = self._build_call(
                n, d, feats.dtype, tk, num_splits, steps_per_core,
                total_steps, vmem_cap)

        out = self._calls[key](feats, w, anc_neg_col, anc_pos_row, pos_t)  # (P_pad,)
        return out[:p_count]


def _reference_loss(features, masks, temperature, num_positives):
    """Pure numpy reference mirroring the PyTorch forward (float64)."""
    feats = np.asarray(features).reshape(features.shape[0], -1).astype(np.float64)
    masks = np.asarray(masks)
    n = feats.shape[0]

    def exp_sim(sel):
        a, b = sel[0], sel[1:]
        denom = np.maximum(np.linalg.norm(b, axis=1) * np.linalg.norm(a), 1e-8)
        return np.exp((b @ a) / denom / temperature)

    neg_idx = np.arange(num_positives + 1, n)
    neg_idx = neg_idx[np.where(masks[num_positives + 1:] == 1)]
    neg_idx = np.concatenate([[0], neg_idx])
    exp_neg = exp_sim(feats[neg_idx])

    pos_idx = np.arange(0, num_positives + 1)
    pos_idx = pos_idx[np.where(masks[:num_positives + 1] == 1)]
    exp_pos = exp_sim(feats[pos_idx])

    return -(np.log(exp_pos) - np.log(exp_pos + exp_neg.sum()))


if __name__ == "__main__":
    key = jax.random.PRNGKey(0)
    k1, k2, k3 = jax.random.split(key, 3)

    # --- test 1: small, single tile (1 anchor + 1 positive + 6 negatives) -----
    num_positives, num_negatives = 1, 6
    N, D = 1 + num_positives + num_negatives, 32
    features = jax.random.normal(k1, (N, D), dtype=jnp.float32)
    masks = np.array([1, 1, 1, 0, 1, 1, 1, 1], dtype=np.int32)   # drops negative row 3
    loss_fn = ContrastiveLoss(temperature=0.1, num_negatives=num_negatives,
                              num_positives=num_positives)
    loss = jax.block_until_ready(loss_fn(features, masks))
    ref = _reference_loss(np.asarray(features), masks, 0.1, num_positives)
    np.testing.assert_allclose(np.asarray(loss), ref, rtol=1e-4, atol=1e-4)

    # --- test 2: multi-tile grid, 2-way core split, ragged tail, padded positives
    num_positives, num_negatives = 2, 36
    N, D = 1 + num_positives + num_negatives, 256
    features = jax.random.normal(k2, (N, D), dtype=jnp.float32)
    masks = np.ones((N,), dtype=np.int32)
    masks[1] = 0    # drop one positive
    masks[7] = 0    # drop two negatives
    masks[20] = 0
    loss_fn = ContrastiveLoss(temperature=0.07, num_negatives=num_negatives,
                              num_positives=num_positives, block_rows=16)
    loss = jax.block_until_ready(loss_fn(features, masks))
    ref = _reference_loss(np.asarray(features), masks, 0.07, num_positives)
    np.testing.assert_allclose(np.asarray(loss), ref, rtol=1e-4, atol=1e-4)

    # --- test 3: tiny temperature -> naive exp() overflows f32; LSE path must not
    num_positives, num_negatives = 1, 14
    N, D = 1 + num_positives + num_negatives, 64
    features = jax.random.normal(k3, (N, D), dtype=jnp.float32)
    features = features.at[2].set(features[0] * 1.5)   # colinear negative: cos = 1
    masks = np.ones((N,), dtype=np.int32)
    loss_fn = ContrastiveLoss(temperature=0.01, num_negatives=num_negatives,
                              num_positives=num_positives)
    loss = jax.block_until_ready(loss_fn(features, masks))
    ref = _reference_loss(np.asarray(features), masks, 0.01, num_positives)
    np.testing.assert_allclose(np.asarray(loss), ref, rtol=1e-4, atol=1e-4)

    # --- bf16 ingress smoke test (native-dtype MXU path, halves DMA bytes) ----
    feats_bf16 = features.astype(jnp.bfloat16)
    loss_bf16 = jax.block_until_ready(loss_fn(feats_bf16, masks))
    assert loss_bf16.shape == loss.shape
    assert bool(np.all(np.isfinite(np.asarray(loss_bf16))))

    print("KERNEL_OK")
</pallas_src>

<mosaic_0001>
module attributes {stable_mosaic.version = 11 : i64} {
  func.func @_neg_lse_kernel(%arg0: i32, %arg1: i32, %arg2: memref<8x32xf32, #tpu.memory_space<vmem>>, %arg3: memref<8x1xf32, #tpu.memory_space<vmem>>, %arg4: memref<32x1xf32, #tpu.memory_space<vmem>>, %arg5: memref<8x128xf32, #tpu.memory_space<vmem>>, %arg6: memref<8x128xf32, #tpu.memory_space<vmem>>, %arg7: memref<1x1xf32, #tpu.memory_space<vmem>>, %arg8: memref<1x1xf32, #tpu.memory_space<vmem>>, %arg9: memref<1x1xf32, #tpu.memory_space<vmem>>) attributes {dimension_semantics = [#tpu.dimension_semantics<parallel>, #tpu.dimension_semantics<arbitrary>], iteration_bounds = array<i64: 1, 1>, scalar_prefetch = 0 : i64, scratch_operands = 3 : i64, tpu.core_type = #tpu.core_type<tc>, window_params = [{transform_indices = @transform_0, window_bounds = array<i64: 8, 32>}, {transform_indices = @transform_1, window_bounds = array<i64: 8, 1>}, {pipeline_mode = #tpu.pipeline_mode<synchronous>, transform_indices = @transform_2, window_bounds = array<i64: 32, 1>}, {transform_indices = @transform_3, window_bounds = array<i64: 8, 128>}, {transform_indices = @transform_4, window_bounds = array<i64: 8, 128>}]} {
    %c0_i32 = arith.constant 0 : i32
    %0 = arith.cmpi eq, %arg1, %c0_i32 : i32
    %1 = arith.extui %0 : i1 to i32
    %c0_i32_0 = arith.constant 0 : i32
    %2 = arith.cmpi ne, %1, %c0_i32_0 : i32
    scf.if %2 {
      %cst_27 = arith.constant -3.40282347E+38 : f32
      %59 = vector.broadcast %cst_27 : f32 to vector<1x1xf32>
      %c0_28 = arith.constant 0 : index
      %c0_29 = arith.constant 0 : index
      %60 = vector.load %arg7[%c0_28, %c0_29] : memref<1x1xf32, #tpu.memory_space<vmem>>, vector<1x1xf32>
      tpu.vector_store %arg7[%c0_28, %c0_29], %59 {strides = array<i32>} : memref<1x1xf32, #tpu.memory_space<vmem>>, vector<1x1xf32>,
      %cst_30 = arith.constant 0.000000e+00 : f32
      %61 = vector.broadcast %cst_30 : f32 to vector<1x1xf32>
      %c0_31 = arith.constant 0 : index
      %c0_32 = arith.constant 0 : index
      %62 = vector.load %arg8[%c0_31, %c0_32] : memref<1x1xf32, #tpu.memory_space<vmem>>, vector<1x1xf32>
      tpu.vector_store %arg8[%c0_31, %c0_32], %61 {strides = array<i32>} : memref<1x1xf32, #tpu.memory_space<vmem>>, vector<1x1xf32>,
      %c0_33 = arith.constant 0 : index
      %c0_34 = arith.constant 0 : index
      %63 = vector.load %arg4[%c0_33, %c0_34] : memref<32x1xf32, #tpu.memory_space<vmem>>, vector<32x1xf32>
      %64 = arith.mulf %63, %63 : vector<32x1xf32>
      %65 = vector.shape_cast %64 : vector<32x1xf32> to vector<1x32x1xf32>
      %cst_35 = arith.constant dense<0.000000e+00> : vector<1xf32>
      %66 = vector.multi_reduction <add>, %65, %cst_35 [1, 2] : vector<1x32x1xf32> to vector<1xf32>
      %67 = vector.shape_cast %66 : vector<1xf32> to vector<1x1x1xf32>
      %68 = vector.extract %67[0, 0, 0] : f32 from vector<1x1x1xf32>
      %69 = vector.broadcast %68 : f32 to vector<1x1xf32>
      %c0_36 = arith.constant 0 : index
      %c0_37 = arith.constant 0 : index
      %70 = vector.load %arg9[%c0_36, %c0_37] : memref<1x1xf32, #tpu.memory_space<vmem>>, vector<1x1xf32>
      tpu.vector_store %arg9[%c0_36, %c0_37], %69 {strides = array<i32>} : memref<1x1xf32, #tpu.memory_space<vmem>>, vector<1x1xf32>,
    } else {
    }
    %c0 = arith.constant 0 : index
    %c0_1 = arith.constant 0 : index
    %3 = vector.load %arg2[%c0, %c0_1] : memref<8x32xf32, #tpu.memory_space<vmem>>, vector<8x32xf32>
    %c0_2 = arith.constant 0 : index
    %c0_3 = arith.constant 0 : index
    %4 = vector.load %arg4[%c0_2, %c0_3] : memref<32x1xf32, #tpu.memory_space<vmem>>, vector<32x1xf32>
    %cst = arith.constant dense<0.000000e+00> : vector<8x1xf32>
    %5 = tpu.matmul %3, %4, %cst {dimension_numbers = #tpu.dot_dimension_numbers<[1], [0], [0], [1], [0, 0, 1, 1], [], []>} : vector<8x32xf32>, vector<32x1xf32>, vector<8x1xf32> -> vector<8x1xf32>
    %6 = arith.mulf %3, %3 : vector<8x32xf32>
    %cst_4 = arith.constant dense<0.000000e+00> : vector<8xf32>
    %7 = vector.multi_reduction <add>, %6, %cst_4 [1] : vector<8x32xf32> to vector<8xf32>
    %8 = vector.shape_cast %7 : vector<8xf32> to vector<8x1xf32>
    %c0_5 = arith.constant 0 : index
    %c0_6 = arith.constant 0 : index
    %9 = vector.load %arg9[%c0_5, %c0_6] : memref<1x1xf32, #tpu.memory_space<vmem>>, vector<1x1xf32>
    %10 = vector.broadcast %9 : vector<1x1xf32> to vector<8x1xf32>
    %11 = arith.mulf %8, %10 : vector<8x1xf32>
    %12 = math.sqrt %11 : vector<8x1xf32>
    %cst_7 = arith.constant 9.99999993E-9 : f32
    %13 = vector.broadcast %cst_7 : f32 to vector<8x1xf32>
    %14 = arith.maximumf %12, %13 : vector<8x1xf32>
    %cst_8 = arith.constant 1.000000e+01 : f32
    %15 = vector.broadcast %cst_8 : f32 to vector<8x1xf32>
    %16 = arith.mulf %5, %15 : vector<8x1xf32>
    %17 = arith.divf %16, %14 : vector<8x1xf32>
    %c1_i32 = arith.constant 1 : i32
    %18 = arith.muli %arg0, %c1_i32 : i32
    %19 = arith.addi %18, %arg1 : i32
    %c8_i32 = arith.constant 8 : i32
    %20 = arith.muli %19, %c8_i32 : i32
    %21 = tpu.iota {dimensions = array<i32: 0>} : vector<8x1xi32>
    %22 = vector.broadcast %20 : i32 to vector<8x1xi32>
    %23 = arith.addi %22, %21 : vector<8x1xi32>
    %c8_i32_9 = arith.constant 8 : i32
    %24 = vector.broadcast %c8_i32_9 : i32 to vector<8x1xi32>
    %25 = arith.cmpi slt, %23, %24 : vector<8x1xi32>
    %c0_10 = arith.constant 0 : index
    %c0_11 = arith.constant 0 : index
    %26 = vector.load %arg3[%c0_10, %c0_11] : memref<8x1xf32, #tpu.memory_space<vmem>>, vector<8x1xf32>
    %cst_12 = arith.constant 0.000000e+00 : f32
    %27 = vector.broadcast %cst_12 : f32 to vector<8x1xf32>
    %28 = arith.cmpf ogt, %26, %27 : vector<8x1xf32>
    %29 = arith.andi %25, %28 : vector<8x1xi1>
    %cst_13 = arith.constant -3.40282347E+38 : f32
    %30 = vector.broadcast %cst_13 : f32 to vector<8x1xf32>
    %31 = arith.select %29, %17, %30 : vector<8x1xi1>, vector<8x1xf32>
    %32 = vector.shape_cast %31 : vector<8x1xf32> to vector<1x8x1xf32>
    %cst_14 = arith.constant dense<0xFF800000> : vector<1xf32>
    %33 = vector.multi_reduction <maximumf>, %32, %cst_14 [1, 2] : vector<1x8x1xf32> to vector<1xf32>
    %34 = vector.shape_cast %33 : vector<1xf32> to vector<1x1x1xf32>
    %35 = vector.extract %34[0, 0, 0] : f32 from vector<1x1x1xf32>
    %36 = vector.broadcast %35 : f32 to vector<1x1xf32>
    %c0_15 = arith.constant 0 : index
    %c0_16 = arith.constant 0 : index
    %37 = vector.load %arg7[%c0_15, %c0_16] : memref<1x1xf32, #tpu.memory_space<vmem>>, vector<1x1xf32>
    %38 = arith.maximumf %37, %36 : vector<1x1xf32>
    %39 = vector.broadcast %38 : vector<1x1xf32> to vector<8x1xf32>
    %40 = arith.subf %17, %39 : vector<8x1xf32>
    %41 = math.exp %40 : vector<8x1xf32>
    %cst_17 = arith.constant 0.000000e+00 : f32
    %42 = vector.broadcast %cst_17 : f32 to vector<8x1xf32>
    %43 = arith.select %29, %41, %42 : vector<8x1xi1>, vector<8x1xf32>
    %c0_18 = arith.constant 0 : index
    %c0_19 = arith.constant 0 : index
    %44 = vector.load %arg8[%c0_18, %c0_19] : memref<1x1xf32, #tpu.memory_space<vmem>>, vector<1x1xf32>
    %45 = arith.subf %37, %38 : vector<1x1xf32>
    %46 = math.exp %45 : vector<1x1xf32>
    %47 = arith.mulf %44, %46 : vector<1x1xf32>
    %48 = vector.shape_cast %43 : vector<8x1xf32> to vector<1x8x1xf32>
    %cst_20 = arith.constant dense<0.000000e+00> : vector<1xf32>
    %49 = vector.multi_reduction <add>, %48, %cst_20 [1, 2] : vector<1x8x1xf32> to vector<1xf32>
    %50 = vector.shape_cast %49 : vector<1xf32> to vector<1x1x1xf32>
    %51 = vector.extract %50[0, 0, 0] : f32 from vector<1x1x1xf32>
    %52 = vector.broadcast %51 : f32 to vector<1x1xf32>
    %53 = arith.addf %47, %52 : vector<1x1xf32>
    %c0_21 = arith.constant 0 : index
    %c0_22 = arith.constant 0 : index
    %54 = vector.load %arg8[%c0_21, %c0_22] : memref<1x1xf32, #tpu.memory_space<vmem>>, vector<1x1xf32>
    tpu.vector_store %arg8[%c0_21, %c0_22], %53 {strides = array<i32>} : memref<1x1xf32, #tpu.memory_space<vmem>>, vector<1x1xf32>,
    %c0_23 = arith.constant 0 : index
    %c0_24 = arith.constant 0 : index
    %55 = vector.load %arg7[%c0_23, %c0_24] : memref<1x1xf32, #tpu.memory_space<vmem>>, vector<1x1xf32>
    tpu.vector_store %arg7[%c0_23, %c0_24], %38 {strides = array<i32>} : memref<1x1xf32, #tpu.memory_space<vmem>>, vector<1x1xf32>,
    %c0_i32_25 = arith.constant 0 : i32
    %56 = arith.cmpi eq, %arg1, %c0_i32_25 : i32
    %57 = arith.extui %56 : i1 to i32
    %c0_i32_26 = arith.constant 0 : i32
    %58 = arith.cmpi ne, %57, %c0_i32_26 : i32
    scf.if %58 {
      %c0_27 = arith.constant 0 : index
      %c0_28 = arith.constant 0 : index
      %59 = vector.load %arg7[%c0_27, %c0_28] : memref<1x1xf32, #tpu.memory_space<vmem>>, vector<1x1xf32>
      %60 = vector.shape_cast %59 : vector<1x1xf32> to vector<1x1xf32>
      %61 = vector.broadcast %60 : vector<1x1xf32> to vector<8x128xf32>
      %c0_29 = arith.constant 0 : index
      %c0_30 = arith.constant 0 : index
      %62 = vector.load %arg5[%c0_29, %c0_30] : memref<8x128xf32, #tpu.memory_space<vmem>>, vector<8x128xf32>
      tpu.vector_store %arg5[%c0_29, %c0_30], %61 {strides = array<i32>} : memref<8x128xf32, #tpu.memory_space<vmem>>, vector<8x128xf32>,
      %c0_31 = arith.constant 0 : index
      %c0_32 = arith.constant 0 : index
      %63 = vector.load %arg8[%c0_31, %c0_32] : memref<1x1xf32, #tpu.memory_space<vmem>>, vector<1x1xf32>
      %64 = vector.shape_cast %63 : vector<1x1xf32> to vector<1x1xf32>
      %65 = vector.broadcast %64 : vector<1x1xf32> to vector<8x128xf32>
      %c0_33 = arith.constant 0 : index
      %c0_34 = arith.constant 0 : index
      %66 = vector.load %arg6[%c0_33, %c0_34] : memref<8x128xf32, #tpu.memory_space<vmem>>, vector<8x128xf32>
      tpu.vector_store %arg6[%c0_33, %c0_34], %65 {strides = array<i32>} : memref<8x128xf32, #tpu.memory_space<vmem>>, vector<8x128xf32>,
    } else {
    }
    return
  }
  func.func @transform_0(%arg0: i32, %arg1: i32) -> (i32, i32) {
    %c1_i32 = arith.constant 1 : i32
    %0 = arith.muli %arg0, %c1_i32 : i32
    %1 = arith.addi %0, %arg1 : i32
    %c0_i32 = arith.constant 0 : i32
    %2 = arith.minsi %1, %c0_i32 : i32
    %c0_i32_0 = arith.constant 0 : i32
    %c0_i32_1 = arith.constant 0 : i32
    return %2, %c0_i32_0 : i32, i32
  }
  func.func @transform_1(%arg0: i32, %arg1: i32) -> (i32, i32) {
    %c1_i32 = arith.constant 1 : i32
    %0 = arith.muli %arg0, %c1_i32 : i32
    %1 = arith.addi %0, %arg1 : i32
    %c0_i32 = arith.constant 0 : i32
    %2 = arith.minsi %1, %c0_i32 : i32
    %c0_i32_0 = arith.constant 0 : i32
    %c0_i32_1 = arith.constant 0 : i32
    return %2, %c0_i32_0 : i32, i32
  }
  func.func @transform_2(%arg0: i32, %arg1: i32) -> (i32, i32) {
    %c0_i32 = arith.constant 0 : i32
    %c0_i32_0 = arith.constant 0 : i32
    %c0_i32_1 = arith.constant 0 : i32
    return %c0_i32, %c0_i32_0 : i32, i32
  }
  func.func @transform_3(%arg0: i32, %arg1: i32) -> (i32, i32) {
    %c0_i32 = arith.constant 0 : i32
    %c0_i32_0 = arith.constant 0 : i32
    return %arg0, %c0_i32 : i32, i32
  }
  func.func @transform_4(%arg0: i32, %arg1: i32) -> (i32, i32) {
    %c0_i32 = arith.constant 0 : i32
    %c0_i32_0 = arith.constant 0 : i32
    return %arg0, %c0_i32 : i32, i32
  }
}

</mosaic_0001>

<bundles_post_ra>
// kernel: run.1
= control target key start
LH: loop header
LB: loop body
LE: loop exit
PB: predicated region body
PF: predicated region fallthrough
CT: control target
= control target key end

     0   :  { %vm85_vm0 = vcmask 7168   ;;  %v346_v3 = vmov 0.0   ;;  %vm347_vm1 = vmmov 0   ;;  %vm109_vm2 = vcmask 261120   ;;  %s412_s2 = inlined_call_operand.vmem [shape: f32[32,1], index: 2, kind: input, shape index: {}]   ;;  %s413_s0 = inlined_call_operand.vmem [shape: f32[8,32], index: 0, kind: input, shape index: {}]   ;;  %s414_s1 = inlined_call_operand.vmem [shape: f32[8,1], index: 1, kind: input, shape index: {}]   ;;  %s415_s3 = inlined_call_operand.vmem [shape: f32[8,128], index: 3, kind: output, shape index: {0}]   ;;  %s416_s4 = inlined_call_operand.vmem [shape: f32[8,128], index: 4, kind: output, shape index: {1}]  }
   0x1   :  { %v77_v0 = vld [vmem:[%s412_s2] sm:$0xff]  ;;  %v78_v1 = vld [vmem:[%s412_s2 + $0x8] sm:$0xff]  ;;  %v79_v2 = vld [vmem:[%s412_s2 + $0x10] sm:$0xff]  ;;  %315 = vmatprep.subr.mxu0 %v346_v3  ;;  %323 = vmatprep.mubr.msk.f32.mxu0 %vm347_vm1, %v346_v3  ;;  %vm74_vm3 = vcmask 0   ;;  %v348_v44 = vmov -3.4028235e+38   ;;  %v232_v53 = vlaneseq }
   0x2   :  { %v80_v4 = vld [vmem:[%s412_s2 + $0x18] sm:$0xff]  ;;  %v81_v5 = vmul.f32 %v77_v0, %v77_v0  ;;  %v82_v6 = vmul.f32 %v78_v1, %v78_v1  ;;  %v83_v7 = vmul.f32 %v79_v2, %v79_v2  ;;  %v104_v15 = vld [vmem:[%s413_s0] sm:$0xff]  ;;  %76 = vst.msk [vmem:[#allocation3] sm:$0x1] %vm74_vm3, %v346_v3  ;;  %75 = vst.msk [vmem:[#allocation2] sm:$0x1] %vm74_vm3, %v348_v44 }
   0x3   :  { %v84_v8 = vmul.f32 %v80_v4, %v80_v4  ;;  %316 = vmatpush3.msra.mxu0 %v80_v4  ;;  %v183_v16 = vmul.f32 %v104_v15, %v104_v15  ;;  %v213_v39 = vld [vmem:[%s414_s1] sm:$0xff]  ;;  %v349_v45 = vmov 0   ;;  %v233_v54 = vshrl.u32 %v232_v53, 7 }
   0x4   :  { %v86_v9 = vsel %vm85_vm0, %v81_v5, 0.0  ;;  %v87_v10 = vsel %vm85_vm0, %v82_v6, 0.0  ;;  %v89_v11 = vsel %vm85_vm0, %v83_v7, 0.0  ;;  %317 = vmatprep.subr.mxu0 %v346_v3  ;;  %vm214_vm6 = vcmp.gt.f32.partialorder %v213_v39, 0.0  ;;  %336 = vset.pattern.permute.xlu0 %v349_v45 }
   0x5   :  { %v88_v12 = vadd.f32 %v87_v10, %v86_v9  ;;  %318 = vmatpush3.msra.mxu0 %v79_v2  ;;  %v91_v13 = vsel %vm85_vm0, %v84_v8, 0.0  ;;  %v184_v18 = vsel %vm109_vm2, %v183_v16, 0.0  ;;  %337 = vset.pattern.permute.xlu1 %v349_v45  ;;  %v234_v56 = vsub.s32 0, %v233_v54 }
   0x6   :  { %319 = vmatprep.subr.mxu0 %v346_v3 }
   0x7   :  { %v90_v14 = vadd.f32 %v89_v11, %v88_v12  ;;  %320 = vmatpush3.msra.mxu0 %v78_v1 }
   0x8   :  { %321 = vmatprep.subr.mxu0 %v346_v3 }
   0x9   :  { %v92_v17 = vadd.f32 %v91_v13, %v90_v14  ;;  %322 = vmatpush3.msra.mxu0 %v77_v0  ;;  %v229_v55 = vld [vmem:[#allocation2] sm:$0x1]  ;;  %v241_v13 = vld [vmem:[#allocation3] sm:$0x1] }
   0xa   :  { %324 = vmatmul.mubr.msk.f32.vlgmr.msra.gmra.mxu0 %vm109_vm2, %v104_v15 }
   0xb   :  { %93 = vadd.xlane.f32.xlu0 %v92_v17 }
   0xf   :  { %185 = vadd.xlane.f32.xlu0 %v184_v18 }
  0x94   :  { %v94_v19 = vpop.xlane.xlu0 %93 }
  0x95   :  { %v95_v20 = vrot.slane %v94_v19, 4 }
  0x97   :  { %v96_v21 = vadd.f32 %v95_v20, %v94_v19 }
  0x98   :  { %v186_v29 = vpop.xlane.xlu0 %185 }
  0x99   :  { %v97_v22 = vrot.slane %v96_v21, 2 }
  0x9b   :  { %v98_v23 = vadd.f32 %v97_v22, %v96_v21 }
  0x9d   :  { %v99_v24 = vrot.slane %v98_v23, 1 }
  0x9f   :  { %v100_v25 = vadd.f32 %v99_v24, %v98_v23 }
  0xa1   :  { %326 = vpush %v100_v25 }
  0xca   :  { %v179_v26 = vpop.f32.mrf.mxu0 }
  0xcb   :  { %v203_v38 = vmul.f32 10.0, %v179_v26 }
  0xcc   :  { %v325_v27 = vpop.f32.mrf.mxu0 }
  0xd2   :  { %s327_s0 = spop %326 }
  0xd3   :  { %v102_v28 = vstv %s327_s0 }
  0xd4   :  { %103 = vst.msk [vmem:[#allocation4] sm:$0x1] %vm74_vm3, %v102_v28 }
  0xdb   :  { %v307_v30 = vld [vmem:[#allocation4] ss:$0 sm:$0xff] }
  0xdc   :  { %v194_v31 = vmul.f32 %v307_v30, %v186_v29 }
  0xde   :  { %338 = vrsqrt.f32 %v194_v31  ;;  %vm197_vm4 = vcmp.eq.f32.partialorder %v194_v31, inf  ;;  %v200_v34 = vand.u32 2147483648, %v194_v31  ;;  %vm199_vm5 = vcmp.eq.f32.partialorder %v194_v31, 0.0 }
  0xeb   :  { %v339_v32 = vpop.eup %338 }
  0xec   :  { %v196_v33 = vmul.f32 %v339_v32, %v194_v31 }
  0xee   :  { %v198_v35 = vsel %vm197_vm4, %v194_v31, %v196_v33 }
  0xef   :  { %v201_v36 = vsel %vm199_vm5, %v200_v34, %v198_v35 }
  0xf0   :  { %v202_v37 = vmax.f32 %v201_v36, 1e-08 }
  0xf2   :  { %340 = vrcp.f32 %v202_v37 }
  0xff   :  { %v341_v40 = vpop.eup %340 }
 0x100   :  { %v205_v41 = vmul.f32 %v341_v40, %v203_v38 }
 0x102   :  { %v216_v42 = vsel %vm214_vm6, %v205_v41, -3.4028235e+38 }
 0x103   :  { %v218_v43 = vsel %vm85_vm0, %v216_v42, -inf }
 0x104   :  { %219 = vmax.xlane.f32.xlu1 %v218_v43 }
 0x18d   :  { %v220_v46 = vpop.xlane.xlu1 %219 }
 0x18e   :  { %v221_v47 = vrot.slane %v220_v46, 4 }
 0x190   :  { %v222_v48 = vmax.f32 %v220_v46, %v221_v47 }
 0x192   :  { %v223_v49 = vrot.slane %v222_v48, 2 }
 0x194   :  { %v224_v50 = vmax.f32 %v222_v48, %v223_v49 }
 0x196   :  { %v225_v51 = vrot.slane %v224_v50, 1 }
 0x198   :  { %v226_v52 = vmax.f32 %v224_v50, %v225_v51 }
 0x19a   :  { %328 = vpush %v226_v52 }
 0x1cb   :  { %s329_s1 = spop %328 }
 0x1cc   :  { %v228_v57 = vstv %s329_s1 }
 0x1cd   :  { %v230_v58 = vmax.f32 %v229_v55, %v228_v57 }
 0x1cf   :  { %v235_v59 = vrot.slane %v230_v58, %v234_v56  ;;  %v242_v60 = vsub.f32 %v229_v55, %v230_v58  ;;  %260 = vst.msk [vmem:[#allocation2] sm:$0x1] %vm74_vm3, %v230_v58 }
 0x1d1   :  { %v237_v61 = vsub.f32 %v205_v41, %v235_v59  ;;  %v243_v11 = vmul.f32 1.442695, %v242_v60 }
 0x1d3   :  { %v238_v62 = vmul.f32 1.442695, %v237_v61 }
 0x1d5   :  { %342 = vpow2.f32 %v238_v62 }
 0x1d6   :  { %v308_v63 = vld [vmem:[#allocation2] ss:$0 sm:$0xff]  ;;  %344 = vpow2.f32 %v243_v11 }
 0x1d7   :  { %271 = vperm.xlu0 %336, %v308_v63  }
 0x1e2   :  { %v343_v0 = vpop.eup %342 }
 0x1e3   :  { %v240_v1 = vsel %vm214_vm6, %v343_v0, 0.0  ;;  %v345_v12 = vpop.eup %344 }
 0x1e4   :  { %v246_v2 = vsel %vm85_vm0, %v240_v1, 0.0  ;;  %v245_v14 = vmul.f32 %v345_v12, %v241_v13 }
 0x1e5   :  { %247 = vadd.xlane.f32.xlu1 %v246_v2 }
 0x252   :  { %v272_v3 = vpop.permute.xlu0 %271 }
 0x253   :  { %274 = vst [vmem:[%s415_s3] sm:$0xff] %v272_v3 }
 0x26e   :  { %v248_v4 = vpop.xlane.xlu1 %247 }
 0x26f   :  { %v249_v5 = vrot.slane %v248_v4, 4 }
 0x271   :  { %v250_v6 = vadd.f32 %v249_v5, %v248_v4 }
 0x273   :  { %v251_v7 = vrot.slane %v250_v6, 2 }
 0x275   :  { %v252_v8 = vadd.f32 %v251_v7, %v250_v6 }
 0x277   :  { %v253_v9 = vrot.slane %v252_v8, 1 }
 0x279   :  { %v254_v10 = vadd.f32 %v253_v9, %v252_v8 }
 0x27b   :  { %330 = vpush %v254_v10 }
 0x2ac   :  { %s331_s28 = spop %330 }
 0x2ad   :  { %v256_v15 = vstv %s331_s28 }
 0x2ae   :  { %v257_v16 = vadd.f32 %v256_v15, %v245_v14 }
 0x2b0   :  { %259 = vst.msk [vmem:[#allocation3] sm:$0x1] %vm74_vm3, %v257_v16 }
 0x2b7   :  { %v309_v17 = vld [vmem:[#allocation3] ss:$0 sm:$0xff] }
 0x2b8   :  { %282 = vperm.xlu1 %337, %v309_v17  }
 0x333   :  { %v283_v18 = vpop.permute.xlu1 %282 }
 0x334   :  { %285 = vst [vmem:[%s416_s4] sm:$0xff] %v283_v18 }

</bundles_post_ra>
